<compile_context>
chip_gen: v7x
topology: tpu7x:2x2x1
jax: 0.10.0
libtpu: 0.0.40
codegen_flags: <defaults>
</compile_context>

<pallas_src>
import functools

import jax
import jax.numpy as jnp
from jax.experimental import pallas as pl
from jax.experimental.pallas import tpu as pltpu


def _round_up(n: int, m: int) -> int:
    return ((n + m - 1) // m) * m


def _vmem_capacity_bytes() -> int:
    try:
        return int(pltpu.get_tpu_info().vmem_capacity_bytes)
    except Exception:
        return 64 * 1024 * 1024  # conservative fallback (v7x per-TC physical)


def _vmem_limit_bytes() -> int:
    """Per-generation scoped-VMEM budget with headroom (~48 MiB v7x, ~100 MiB v5e/v6e)."""
    cap = _vmem_capacity_bytes()
    return int(max(32 * 1024 * 1024,
                   min(cap - 16 * 1024 * 1024, 100 * 1024 * 1024)))


def _default_block_rows() -> int:
    """Row-tile default per generation: v5e/v6e (128 MiB VMEM) -> 512, v7x (64 MiB) -> 256."""
    return 512 if _vmem_capacity_bytes() >= 128 * 1024 * 1024 else 256


def _default_hidden_chunk(hidden: int) -> int:
    """Largest multiple-of-128 divisor of H that is <= 2048 (bounds the f32 GELU buffer)."""
    if hidden <= 2048:
        return hidden
    for c in range(2048, 0, -128):
        if hidden % c == 0:
            return c
    return 128


def _mlp_block_kernel(x_ref, w1_ref, b1_ref, w2_ref, b2_ref, o_ref, *, hidden_chunk):
    # x_ref: (tile_n, D) bf16 row tile.  Weight/bias refs are full, single-buffered
    # VMEM-resident blocks (constant index_map -> DMA'd once, reused every step).
    x = x_ref[...]
    tile_n, d_out = o_ref.shape
    hidden = w1_ref.shape[1]
    n_chunks = hidden // hidden_chunk

    def body(k, acc):
        start = pl.multiple_of(k * hidden_chunk, 128)
        w1c = w1_ref[:, pl.ds(start, hidden_chunk)]           # (D, chunk) bf16
        b1c = b1_ref[:, pl.ds(start, hidden_chunk)].astype(jnp.float32)
        # Linear D -> chunk on the MXU: bf16 operands, f32 accumulation.
        h = jnp.dot(x, w1c, preferred_element_type=jnp.float32) + b1c
        # GELU (tanh approximation, == torch.nn.GELU(approximate='tanh')).
        # TODO(synk): torch.nn.GELU() defaults to the exact erf form; switch to
        # jax.nn.gelu(h, approximate=False) if bit-parity with that default is required.
        h = jax.nn.gelu(h)
        w2c = w2_ref[pl.ds(start, hidden_chunk), :]            # (chunk, D) bf16
        # Linear chunk -> D, accumulated across hidden chunks in f32.
        return acc + jnp.dot(h.astype(w2c.dtype), w2c,
                             preferred_element_type=jnp.float32)

    acc = jax.lax.fori_loop(0, n_chunks, body,
                            jnp.zeros((tile_n, d_out), jnp.float32),
                            unroll=True)
    y = acc + b2_ref[...].astype(jnp.float32)
    o_ref[...] = y.astype(o_ref.dtype)


def mlp_block(x, params, *, block_rows=None, hidden_chunk=None,
              activation_dtype=jnp.bfloat16):
    """Apply the MLPBlock forward to a SequenceTensor x of shape (B, S, D)."""
    w1, b1, w2, b2 = params
    B, S, D = x.shape
    H = w1.shape[1]
    assert w1.shape == (D, H) and w2.shape == (H, D)
    assert b1.shape == (1, H) and b2.shape == (1, D)
    assert D % 128 == 0 and H % 128 == 0, "keep lane dims multiples of 128"

    if block_rows is None:
        block_rows = _default_block_rows()
    if hidden_chunk is None:
        hidden_chunk = _default_hidden_chunk(H)
    assert block_rows % 8 == 0
    assert hidden_chunk % 128 == 0 and H % hidden_chunk == 0

    N = B * S
    # Cap tile_n at ~N/2 (rounded up to 8) so there are always >= 2 row tiles
    # for v7x's 2 TensorCores; at training size tile_n == block_rows anyway.
    tile_n = min(block_rows, max(8, _round_up((N + 1) // 2, 8)))
    grid = (pl.cdiv(N, tile_n),)   # ragged last tile handled by Pallas masking

    # Stream activations in bf16 (one cast in the producer; halves x/y DMA).
    x2 = x.reshape(N, D).astype(activation_dtype)

    act_bytes = jnp.dtype(activation_dtype).itemsize
    w_bytes = jnp.dtype(w1.dtype).itemsize
    cost = pl.CostEstimate(
        flops=4 * N * D * H,                       # two (N,D,H) matmuls
        transcendentals=N * H,                     # GELU tanh
        bytes_accessed=(2 * N * D * act_bytes      # x in + y out
                        + 2 * D * H * w_bytes      # W1 + W2
                        + (H + D) * b1.dtype.itemsize),
    )

    resident = functools.partial(pl.BlockSpec, index_map=lambda i: (0, 0),
                                 pipeline_mode=pl.Buffered(1))

    out = pl.pallas_call(
        functools.partial(_mlp_block_kernel, hidden_chunk=hidden_chunk),
        out_shape=jax.ShapeDtypeStruct((N, D), activation_dtype),
        grid=grid,
        in_specs=[
            pl.BlockSpec((tile_n, D), lambda i: (i, 0)),  # x row tile (bf16)
            resident((D, H)),                              # W1 (resident, single-buffered)
            resident((1, H)),                              # b1
            resident((H, D)),                              # W2 (resident, single-buffered)
            resident((1, D)),                              # b2
        ],
        out_specs=pl.BlockSpec((tile_n, D), lambda i: (i, 0)),  # lane-dense (N,D)
        compiler_params=pltpu.CompilerParams(
            dimension_semantics=("parallel",),   # megacore-shards the row axis
            vmem_limit_bytes=_vmem_limit_bytes(),
        ),
        cost_estimate=cost,
    )(x2, w1, b1, w2, b2)

    # Single consumer-side cast back to the caller's dtype (no-op if bf16 end-to-end).
    return out.reshape(B, S, D).astype(x.dtype)


def reference(x, params, activation_dtype=jnp.bfloat16):
    """Pure-JAX reference of the same forward (same bf16-stream / f32-accum math)."""
    w1, b1, w2, b2 = params
    B, S, D = x.shape
    x2 = x.reshape(-1, D).astype(activation_dtype)
    h = jnp.dot(x2, w1, preferred_element_type=jnp.float32) + b1
    h = jax.nn.gelu(h)
    y = jnp.dot(h.astype(w2.dtype), w2, preferred_element_type=jnp.float32) + b2
    return y.astype(activation_dtype).astype(x.dtype).reshape(B, S, D)


def init_params(key, dim, hidden, param_dtype=jnp.bfloat16):
    k1, k2, k3, k4 = jax.random.split(key, 4)
    w1 = (0.02 * jax.random.normal(k1, (dim, hidden), jnp.float32)).astype(param_dtype)
    b1 = 0.02 * jax.random.normal(k2, (1, hidden), jnp.float32)
    w2 = (0.02 * jax.random.normal(k3, (hidden, dim), jnp.float32)).astype(param_dtype)
    b2 = 0.02 * jax.random.normal(k4, (1, dim), jnp.float32)
    return w1, b1, w2, b2


if __name__ == "__main__":
    # Small shapes consistent with the module: SequenceTensor (B, S, D), hidden =
    # expansion_factor * D.  S=9 gives N=18 so the ragged last row tile exercises
    # Pallas boundary masking (no pad/slice round trip); block_rows=8 gives a
    # multi-tile grid and hidden_chunk=256 exercises the H-chunked inner loop.
    B, S, D, EXPANSION = 2, 9, 128, 4
    H = EXPANSION * D

    key = jax.random.PRNGKey(0)
    kx, kp = jax.random.split(key)
    x = jax.random.normal(kx, (B, S, D), jnp.float32)
    params = init_params(kp, D, H, param_dtype=jnp.bfloat16)

    out = jax.block_until_ready(mlp_block(x, params, block_rows=8, hidden_chunk=256))
    ref = reference(x, params)

    assert out.shape == (B, S, D)
    assert jnp.allclose(out, ref, atol=1e-2, rtol=1e-2), "mismatch vs reference"

    print("KERNEL_OK")
</pallas_src>

<mosaic_0001>
module attributes {stable_mosaic.version = 11 : i64} {
  func.func @_mlp_block_kernel(%arg0: i32, %arg1: memref<8x128xbf16, #tpu.memory_space<vmem>>, %arg2: memref<128x512xbf16, #tpu.memory_space<vmem>>, %arg3: memref<1x512xf32, #tpu.memory_space<vmem>>, %arg4: memref<512x128xbf16, #tpu.memory_space<vmem>>, %arg5: memref<1x128xf32, #tpu.memory_space<vmem>>, %arg6: memref<8x128xbf16, #tpu.memory_space<vmem>>) attributes {dimension_semantics = [#tpu.dimension_semantics<parallel>], iteration_bounds = array<i64: 3>, scalar_prefetch = 0 : i64, scratch_operands = 0 : i64, tpu.core_type = #tpu.core_type<tc>, window_params = [{transform_indices = @transform_0, window_bounds = array<i64: 8, 128>}, {pipeline_mode = #tpu.pipeline_mode<synchronous>, transform_indices = @transform_1, window_bounds = array<i64: 128, 512>}, {pipeline_mode = #tpu.pipeline_mode<synchronous>, transform_indices = @transform_2, window_bounds = array<i64: 1, 512>}, {pipeline_mode = #tpu.pipeline_mode<synchronous>, transform_indices = @transform_3, window_bounds = array<i64: 512, 128>}, {pipeline_mode = #tpu.pipeline_mode<synchronous>, transform_indices = @transform_4, window_bounds = array<i64: 1, 128>}, {transform_indices = @transform_5, window_bounds = array<i64: 8, 128>}]} {
    %c0 = arith.constant 0 : index
    %c0_0 = arith.constant 0 : index
    %0 = vector.load %arg1[%c0, %c0_0] : memref<8x128xbf16, #tpu.memory_space<vmem>>, vector<8x128xbf16>
    %cst = arith.constant 0.000000e+00 : f32
    %1 = vector.broadcast %cst : f32 to vector<8x128xf32>
    %c0_i32 = arith.constant 0 : i32
    %c256_i32 = arith.constant 256 : i32
    %2 = arith.muli %c0_i32, %c256_i32 : i32
    %3 = tpu.assume_multiple %2, 128 : i32
    %c0_1 = arith.constant 0 : index
    %4 = arith.index_cast %3 : i32 to index
    %5 = vector.load %arg2[%c0_1, %4] : memref<128x512xbf16, #tpu.memory_space<vmem>>, vector<128x256xbf16>
    %c0_2 = arith.constant 0 : index
    %6 = arith.index_cast %3 : i32 to index
    %7 = vector.load %arg3[%c0_2, %6] : memref<1x512xf32, #tpu.memory_space<vmem>>, vector<1x256xf32>
    %cst_3 = arith.constant dense<0.000000e+00> : vector<8x256xf32>
    %8 = tpu.matmul %0, %5, %cst_3 {dimension_numbers = #tpu.dot_dimension_numbers<[1], [0], [0], [1], [0, 0, 1, 1], [], []>} : vector<8x128xbf16>, vector<128x256xbf16>, vector<8x256xf32> -> vector<8x256xf32>
    %9 = vector.broadcast %7 : vector<1x256xf32> to vector<8x256xf32>
    %10 = arith.addf %8, %9 : vector<8x256xf32>
    %11 = arith.mulf %10, %10 : vector<8x256xf32>
    %12 = arith.mulf %10, %11 : vector<8x256xf32>
    %cst_4 = arith.constant 4.471500e-02 : f32
    %13 = vector.broadcast %cst_4 : f32 to vector<8x256xf32>
    %14 = arith.mulf %13, %12 : vector<8x256xf32>
    %15 = arith.addf %10, %14 : vector<8x256xf32>
    %cst_5 = arith.constant 0.797884583 : f32
    %16 = vector.broadcast %cst_5 : f32 to vector<8x256xf32>
    %17 = arith.mulf %16, %15 : vector<8x256xf32>
    %18 = math.tanh %17 : vector<8x256xf32>
    %cst_6 = arith.constant 1.000000e+00 : f32
    %19 = vector.broadcast %cst_6 : f32 to vector<8x256xf32>
    %20 = arith.addf %19, %18 : vector<8x256xf32>
    %cst_7 = arith.constant 5.000000e-01 : f32
    %21 = vector.broadcast %cst_7 : f32 to vector<8x256xf32>
    %22 = arith.mulf %21, %20 : vector<8x256xf32>
    %23 = arith.mulf %10, %22 : vector<8x256xf32>
    %24 = arith.index_cast %3 : i32 to index
    %c0_8 = arith.constant 0 : index
    %25 = vector.load %arg4[%24, %c0_8] : memref<512x128xbf16, #tpu.memory_space<vmem>>, vector<256x128xbf16>
    %26 = arith.truncf %23 : vector<8x256xf32> to vector<8x256xbf16>
    %cst_9 = arith.constant dense<0.000000e+00> : vector<8x128xf32>
    %27 = tpu.matmul %26, %25, %cst_9 {dimension_numbers = #tpu.dot_dimension_numbers<[1], [0], [0], [1], [0, 0, 1, 1], [], []>} : vector<8x256xbf16>, vector<256x128xbf16>, vector<8x128xf32> -> vector<8x128xf32>
    %28 = arith.addf %1, %27 : vector<8x128xf32>
    %c1_i32 = arith.constant 1 : i32
    %c256_i32_10 = arith.constant 256 : i32
    %29 = arith.muli %c1_i32, %c256_i32_10 : i32
    %30 = tpu.assume_multiple %29, 128 : i32
    %c0_11 = arith.constant 0 : index
    %31 = arith.index_cast %30 : i32 to index
    %32 = vector.load %arg2[%c0_11, %31] : memref<128x512xbf16, #tpu.memory_space<vmem>>, vector<128x256xbf16>
    %c0_12 = arith.constant 0 : index
    %33 = arith.index_cast %30 : i32 to index
    %34 = vector.load %arg3[%c0_12, %33] : memref<1x512xf32, #tpu.memory_space<vmem>>, vector<1x256xf32>
    %cst_13 = arith.constant dense<0.000000e+00> : vector<8x256xf32>
    %35 = tpu.matmul %0, %32, %cst_13 {dimension_numbers = #tpu.dot_dimension_numbers<[1], [0], [0], [1], [0, 0, 1, 1], [], []>} : vector<8x128xbf16>, vector<128x256xbf16>, vector<8x256xf32> -> vector<8x256xf32>
    %36 = vector.broadcast %34 : vector<1x256xf32> to vector<8x256xf32>
    %37 = arith.addf %35, %36 : vector<8x256xf32>
    %38 = arith.mulf %37, %37 : vector<8x256xf32>
    %39 = arith.mulf %37, %38 : vector<8x256xf32>
    %cst_14 = arith.constant 4.471500e-02 : f32
    %40 = vector.broadcast %cst_14 : f32 to vector<8x256xf32>
    %41 = arith.mulf %40, %39 : vector<8x256xf32>
    %42 = arith.addf %37, %41 : vector<8x256xf32>
    %cst_15 = arith.constant 0.797884583 : f32
    %43 = vector.broadcast %cst_15 : f32 to vector<8x256xf32>
    %44 = arith.mulf %43, %42 : vector<8x256xf32>
    %45 = math.tanh %44 : vector<8x256xf32>
    %cst_16 = arith.constant 1.000000e+00 : f32
    %46 = vector.broadcast %cst_16 : f32 to vector<8x256xf32>
    %47 = arith.addf %46, %45 : vector<8x256xf32>
    %cst_17 = arith.constant 5.000000e-01 : f32
    %48 = vector.broadcast %cst_17 : f32 to vector<8x256xf32>
    %49 = arith.mulf %48, %47 : vector<8x256xf32>
    %50 = arith.mulf %37, %49 : vector<8x256xf32>
    %51 = arith.index_cast %30 : i32 to index
    %c0_18 = arith.constant 0 : index
    %52 = vector.load %arg4[%51, %c0_18] : memref<512x128xbf16, #tpu.memory_space<vmem>>, vector<256x128xbf16>
    %53 = arith.truncf %50 : vector<8x256xf32> to vector<8x256xbf16>
    %cst_19 = arith.constant dense<0.000000e+00> : vector<8x128xf32>
    %54 = tpu.matmul %53, %52, %cst_19 {dimension_numbers = #tpu.dot_dimension_numbers<[1], [0], [0], [1], [0, 0, 1, 1], [], []>} : vector<8x256xbf16>, vector<256x128xbf16>, vector<8x128xf32> -> vector<8x128xf32>
    %55 = arith.addf %28, %54 : vector<8x128xf32>
    %c2_i32 = arith.constant 2 : i32
    %c0_20 = arith.constant 0 : index
    %c0_21 = arith.constant 0 : index
    %56 = vector.load %arg5[%c0_20, %c0_21] : memref<1x128xf32, #tpu.memory_space<vmem>>, vector<1x128xf32>
    %57 = vector.broadcast %56 : vector<1x128xf32> to vector<8x128xf32>
    %58 = arith.addf %55, %57 : vector<8x128xf32>
    %59 = arith.truncf %58 : vector<8x128xf32> to vector<8x128xbf16>
    %c0_22 = arith.constant 0 : index
    %c0_23 = arith.constant 0 : index
    %60 = vector.load %arg6[%c0_22, %c0_23] : memref<8x128xbf16, #tpu.memory_space<vmem>>, vector<8x128xbf16>
    tpu.vector_store %arg6[%c0_22, %c0_23], %59 {strides = array<i32>} : memref<8x128xbf16, #tpu.memory_space<vmem>>, vector<8x128xbf16>,
    return
  }
  func.func @transform_0(%arg0: i32) -> (i32, i32) {
    %c0_i32 = arith.constant 0 : i32
    %c0_i32_0 = arith.constant 0 : i32
    return %arg0, %c0_i32 : i32, i32
  }
  func.func @transform_1(%arg0: i32) -> (i32, i32) {
    %c0_i32 = arith.constant 0 : i32
    %c0_i32_0 = arith.constant 0 : i32
    %c0_i32_1 = arith.constant 0 : i32
    return %c0_i32, %c0_i32_0 : i32, i32
  }
  func.func @transform_2(%arg0: i32) -> (i32, i32) {
    %c0_i32 = arith.constant 0 : i32
    %c0_i32_0 = arith.constant 0 : i32
    %c0_i32_1 = arith.constant 0 : i32
    return %c0_i32, %c0_i32_0 : i32, i32
  }
  func.func @transform_3(%arg0: i32) -> (i32, i32) {
    %c0_i32 = arith.constant 0 : i32
    %c0_i32_0 = arith.constant 0 : i32
    %c0_i32_1 = arith.constant 0 : i32
    return %c0_i32, %c0_i32_0 : i32, i32
  }
  func.func @transform_4(%arg0: i32) -> (i32, i32) {
    %c0_i32 = arith.constant 0 : i32
    %c0_i32_0 = arith.constant 0 : i32
    %c0_i32_1 = arith.constant 0 : i32
    return %c0_i32, %c0_i32_0 : i32, i32
  }
  func.func @transform_5(%arg0: i32) -> (i32, i32) {
    %c0_i32 = arith.constant 0 : i32
    %c0_i32_0 = arith.constant 0 : i32
    return %arg0, %c0_i32 : i32, i32
  }
}

</mosaic_0001>

<bundles_post_ra>
// kernel: tpu_custom_call.1
= control target key start
LH: loop header
LB: loop body
LE: loop exit
PB: predicated region body
PF: predicated region fallthrough
CT: control target
= control target key end

     0   :  { %10 = vsyncpa [#allocation3], 0  ;;  %s1780_s0 = inlined_call_operand.hbm [shape: bf16[18,128], index: 0, kind: input, shape index: {}]   ;;  %s1781_s1 = inlined_call_operand.hbm [shape: bf16[128,512], index: 1, kind: input, shape index: {}]   ;;  %s1782_s2 = inlined_call_operand.vmem [shape: f32[1,512], index: 2, kind: input, shape index: {}]   ;;  %s1783_s3 = inlined_call_operand.hbm [shape: bf16[512,128], index: 3, kind: input, shape index: {}]   ;;  %s1784_s4 = inlined_call_operand.vmem [shape: f32[1,128], index: 4, kind: input, shape index: {}]   ;;  %s1785_s5 = inlined_call_operand.hbm [shape: bf16[18,128], index: 5, kind: output, shape index: {}]  }
   0x1   :  { %12 = vsyncpa [#allocation3 + $0x1], 0 }
   0x2   :  { %13 = vsyncpa [#allocation6], 0 }
   0x3   :  { %14 = vsyncpa [#allocation4], 0 }
   0x4   :  { %16 = vsyncpa [#allocation4 + $0x1], 0  ;;  %s1544_s18 = smov 0   ;;  %s1546_s19 = smov 0  }
   0x5   :  { %s1548_s20 = smov 0   ;;  %s1550_s21 = smov 0  }
   0x6 LB: > { %s1565_s22 = sadd.s32 4294967295, %s1503_s21   ;;  %s1061_s23 = sadd.s32 4294967294, %s1503_s21   ;;  %s1503_s21 = sphi %s1550_s21, %s1804_s21   ;;  %s1499_s20 = sphi %s1548_s20, %s1803_s20   ;;  %s1495_s19 = sphi %s1546_s19, %s1802_s19   ;;  %s1491_s18 = sphi %s1544_s18, %s1801_s18  }
   0x7   : > { %p42_p0 = scmp.ne.s32.totalorder %s1495_s19, %s1491_s18  ;;  %p1786_p1 = scmp.eq.s32.totalorder %s1565_s22, 0 }
   0x8   : > { %p156_p3 = scmp.eq.s32.totalorder %s1061_s23, 2  ;;  %p1062_p5 = scmp.ge.s32.totalorder %s1503_s21, 1 }
   0x9   : > { %p1574_p4 = por %p1786_p1, %p42_p0  ;;  %p163_p7 = scmp.lt.s32.totalorder %s1503_s21, 4 }
   0xa   : > { %p1579_p6 = por %p156_p3, %p42_p0  ;;  %s1505_s27 = smov [#allocation5]  }
   0xb   : > { %s1789_s24 = scalar_select %p1574_p4, 1, 0 }
   0xc   : > { %s1790_s25 = scalar_select %p1579_p6, 1, 0 }
   0xd   : > { %p1584_p8 = pnand %p1062_p5, %p163_p7  ;;  %s175_s28 = sshll.u32 %s1505_s27, 4  ;;  %s176_s28 = int_to_ptr.vmem [resolvable:$true] %s175_s28 }
   0xe   : > { %s1506_s30 = smov [#allocation7]   ;;  %s1347_s9 = scalar_lea.hbm %s1781_s1, 4096 }
   0xf   : > { %s1791_s26 = scalar_select %p1584_p8, 1, 0 }
  0x10   : > { %p1199_p9 = pneg %p1584_p8  ;;  %s191_s6 = sshll.u32 %s1506_s30, 4  ;;  %s1596_s6 = int_to_ptr.vmem [resolvable:$true] %s191_s6 }
  0x11   : > { %p1348_p11 = scmp.ne.s32.totalorder %s1781_s1, %s1347_s9  ;;  %p1354_p3 = scmp.lt.u32.totalorder %s1347_s9, %s1781_s1 }
  0x12   : > { %p1592_p10 = pnand %p1199_p9, %p1786_p1 }
  0x14   : > { %p1349_p12 = pneg %p1592_p10 }
  0x16   : > { %p1350_p13 = pnand %p1349_p12, %p1348_p11 }
  0x18   : > { %p1351_p0 = pneg %p1350_p13 }
  0x1a   : > { %p1356_p5 = pnand %p1354_p3, %p1351_p0 }
  0x1c   : > { %1359 = shalt.err (!%p1356_p5)
}
  0x1d   : > { %s1360_s14 = scalar_lea.vmem %s176_s28, 4096  ;;  %p1368_p2 = scmp.lt.s32.totalorder %s176_s28, %s176_s28 }
  0x1e   : > { %p1361_p7 = scmp.ne.s32.totalorder %s176_s28, %s1360_s14  ;;  %p1369_p6 = scmp.lt.s32.totalorder %s1360_s14, %s1360_s14 }
  0x20   : > { %p1363_p9 = pnand %p1361_p7, %p1349_p12  ;;  %p1370_p4 = por %p1369_p6, %p1368_p2 }
  0x22   : > { %p1364_p1 = pneg %p1363_p9 }
  0x24   : > { %p1371_p8 = pnand %p1370_p4, %p1364_p1 }
  0x26   : > { %1374 = shalt.err (!%p1371_p8)
}
  0x27   : > { %s1507_s15 = smov 256   ;;  %s1508_s16 = smov 16  }
  0x28   : > { %1202 = dma.hbm_to_vmem [thread:$0]  (!%p1592_p10), %s1781_s1, 4096, %s176_s28, [#allocation6], %s1507_s15, %s1507_s15, %s1508_s16  }
  0x29   : > { %s1375_s7 = scalar_lea.hbm %s1783_s3, 4096 }
  0x2a   : > { %p1376_p11 = scmp.ne.s32.totalorder %s1783_s3, %s1375_s7  ;;  %p1382_p4 = scmp.lt.u32.totalorder %s1375_s7, %s1783_s3 }
  0x2c   : > { %p1378_p1 = pnand %p1376_p11, %p1349_p12 }
  0x2e   : > { %p1379_p2 = pneg %p1378_p1 }
  0x30   : > { %p1384_p6 = pnand %p1382_p4, %p1379_p2 }
  0x32   : > { %1387 = shalt.err (!%p1384_p6)
}
  0x33   : > { %s1388_s28 = scalar_lea.vmem %s1596_s6, 4096  ;;  %p1396_p3 = scmp.lt.s32.totalorder %s1596_s6, %s1596_s6 }
  0x34   : > { %p1389_p8 = scmp.ne.s32.totalorder %s1596_s6, %s1388_s28  ;;  %p1397_p5 = scmp.lt.s32.totalorder %s1388_s28, %s1388_s28 }
  0x36   : > { %p1391_p13 = pnand %p1389_p8, %p1349_p12  ;;  %p1398_p7 = por %p1397_p5, %p1396_p3 }
  0x38   : > { %p1392_p0 = pneg %p1391_p13 }
  0x3a   : > { %p1399_p9 = pnand %p1398_p7, %p1392_p0 }
  0x3c   : > { %1402 = shalt.err (!%p1399_p9)
}
  0x3d   : > { %s1509_s12 = smov 64   ;;  %s1510_s13 = smov 4  }
  0x3e   : > { %1205 = dma.hbm_to_vmem [thread:$0]  (!%p1592_p10), %s1783_s3, 4096, %s1596_s6, [#allocation6], %s1509_s12, %s1509_s12, %s1510_s13  }
  0x3f   : > { %s1646_s16 = sadd.s32 1, %s1503_s21   ;;  %s29_s23 = sadd.s32 1, %s1499_s20 }
  0x40   : > { %s26_s17 = ssub.s32 %s1503_s21, %s1646_s16  ;;  %p36_p11 = scmp.ne.s32.totalorder %s1499_s20, %s1495_s19 }
  0x41   : > { %p27_p12 = scmp.eq.s32.totalorder %s26_s17, 0  ;;  %p37_p1 = scmp.eq.s32.totalorder %s1503_s21, 0 }
  0x42   : > { %p1793_p4 = scmp.eq.s32.totalorder %s1565_s22, 2  ;;  %p1216_p8 = scmp.lt.s32.totalorder %s1503_s21, 3 }
  0x43   : > { %s1655_s27 = scalar_select %p27_p12, %s1499_s20, %s29_s23  }
  0x44   : > { %p38_p2 = por %p37_p1, %p36_p11  ;;  %p1659_p6 = por %p1793_p4, %p36_p11 }
  0x45   : > { %s208_s29 = sand.u32 1, %s1499_s20   ;;  %s1067_s6 = sshll.u32 %s1503_s21, 6 }
  0x46   : > { %s1066_s7 = sshll.u32 %s208_s29, 2  ;;  %s1669_s10 = scalar_lea.hbm %s1780_s0, %s1067_s6 }
  0x47   : > { %s212_s11 = scalar_lea.vmem [#allocation2], %s1066_s7  ;;  %p1673_p10 = pnand %p1216_p8, %p38_p2 }
  0x48   : > { %s219_s28 = sshll.u32 %s212_s11, 4  ;;  %s209_s13 = scalar_lea.sflag [#allocation3], %s208_s29  ;;  %s1671_s28 = int_to_ptr.vmem [resolvable:$true] %s219_s28 }
  0x49   : > { %s1403_s14 = scalar_lea.hbm %s1669_s10, 64  ;;  %p1405_p0 = pneg %p1673_p10 }
  0x4a   : > { %p1404_p13 = scmp.ne.s32.totalorder %s1669_s10, %s1403_s14  ;;  %s1408_s23 = scalar_lea.hbm %s1780_s0, 192 }
  0x4b   : > { %p1409_p7 = scmp.lt.u32.totalorder %s1669_s10, %s1780_s0  ;;  %p1410_p9 = scmp.lt.u32.totalorder %s1408_s23, %s1403_s14 }
  0x4c   : > { %p1406_p3 = pnand %p1405_p0, %p1404_p13  ;;  %p1412_p11 = scmp.lt.u32.totalorder %s1403_s14, %s1669_s10 }
  0x4d   : > { %p1411_p12 = por %p1410_p9, %p1409_p7 }
  0x4e   : > { %p1407_p5 = pneg %p1406_p3 }
  0x4f   : > { %p1413_p1 = por %p1412_p11, %p1411_p12 }
  0x51   : > { %p1414_p2 = pnand %p1413_p1, %p1407_p5 }
  0x53   : > { %1417 = shalt.err (!%p1414_p2)
}
  0x54   : > { %s1418_s29 = scalar_lea.vmem %s1671_s28, 64  ;;  %s1511_s8 = smov [#allocation2]  }
  0x55   : > { %p1419_p4 = scmp.ne.s32.totalorder %s1671_s28, %s1418_s29  ;;  %s1423_s9 = sshll.u32 %s1511_s8, 4  ;;  %s1424_s9 = int_to_ptr.vmem [resolvable:$false] %s1423_s9 }
  0x56   : > { %s1425_s11 = scalar_lea.vmem %s1424_s9, 128  ;;  %p1426_p3 = scmp.lt.s32.totalorder %s1671_s28, %s1424_s9 }
  0x57   : > { %p1421_p8 = pnand %p1419_p4, %p1405_p0  ;;  %p1427_p7 = scmp.lt.s32.totalorder %s1425_s11, %s1418_s29 }
  0x59   : > { %p1422_p13 = pneg %p1421_p8  ;;  %p1428_p9 = por %p1427_p7, %p1426_p3 }
  0x5b   : > { %p1429_p12 = pnand %p1428_p9, %p1422_p13 }
  0x5d   : > { %1432 = shalt.err (!%p1429_p12)
}
  0x5e   : > { %1209 = dma.hbm_to_vmem [thread:$0]  (!%p1673_p10), %s1669_s10, 64, %s1671_s28, %s209_s13  }
  0x5f   : > { %p1796_p5 = scmp.ne.s32.totalorder %s1791_s26, 0 }
  0x60   : > { %s1705_s14 = sand.u32 (!%p1796_p5), 1, %s1495_s19   ;;  %p1797_p0 = scmp.ne.s32.totalorder (!%p1796_p5), %s1789_s24, 0 }
  0x61   : > { %228 = sbr.rel (%p1796_p5) target bundleno = 624 (0x270), region = 40  ;;  %s1069_s15 = sshll.u32 (!%p1796_p5), %s1705_s14, 2 }
  0x62   : > { %s231_s17 = scalar_lea.sflag (!%p1796_p5), [#allocation3], %s1705_s14  ;;  %s1711_s23 = scalar_lea.vmem (!%p1796_p5), [#allocation2], %s1069_s15 }
  0x68   : > { %1478 = dma.done.wait (%p1797_p0), %s231_s17, 64  }
  0x69   : > { %1480 = vsyncadd (%p1797_p0), %s231_s17, 4294967232  ;;  %p1798_p10 = scmp.eq.s32.totalorder %s1565_s22, 0 }
  0x6b   : > { %1482 = dma.done.wait (%p1798_p10), [#allocation6], 8192   ;;  %p1799_p11 = pmov %p1798_p10 }
  0x6c   : > { %v1512_v0 = vmov 0   ;;  %v1259_v1 = vld [vmem:[#allocation5 + $0x4] ss:$16 sps:$4 sm:$0xff]   ;;  %v1261_v2 = vld [vmem:[#allocation5 + $0xc] ss:$16 sps:$4 sm:$0xff]   ;;  %s1140_s7 = sshll.u32 %s1565_s22, 6 }
  0x6d   : > { %1484 = vsyncadd (%p1799_p11), [#allocation6], 4294959104  ;;  %411 = vmatprep.mubr.bf16.mxu0 %v1512_v0  ;;  %614 = vmatprep.mubr.bf16.mxu1 %v1512_v0  ;;  %v1263_v3 = vld [vmem:[#allocation5] ss:$16 sps:$4 sm:$0xff]   ;;  %v1264_v4 = vld [vmem:[#allocation5 + $0x8] ss:$16 sps:$4 sm:$0xff]   ;;  %s1737_s11 = scalar_lea.hbm %s1785_s5, %s1140_s7 }
  0x6e   : > { %379 = vmatprep.subr.bf16.mxu0 %v1259_v1  ;;  %582 = vmatprep.subr.bf16.mxu1 %v1261_v2  ;;  %v1265_v5 = vld [vmem:[#allocation5 + $0x24] ss:$16 sps:$4 sm:$0xff]   ;;  %v1267_v6 = vld [vmem:[#allocation5 + $0x2c] ss:$16 sps:$4 sm:$0xff]   ;;  %v1269_v7 = vld [vmem:[#allocation5 + $0x20] ss:$16 sps:$4 sm:$0xff]   ;;  %v289_v2 = vlaneseq }
  0x6f   : > { %380 = vmatpush1.bf16.msra.mxu0 %v1263_v3  ;;  %583 = vmatpush1.bf16.msra.mxu1 %v1264_v4  ;;  %v1270_v8 = vld [vmem:[#allocation5 + $0x28] ss:$16 sps:$4 sm:$0xff]   ;;  %v1271_v9 = vld [vmem:[#allocation5 + $0x44] ss:$16 sps:$4 sm:$0xff]   ;;  %v1273_v10 = vld [vmem:[#allocation5 + $0x4c] ss:$16 sps:$4 sm:$0xff]  }
  0x70   : > { %381 = vmatprep.subr.bf16.mxu0 %v1265_v5  ;;  %584 = vmatprep.subr.bf16.mxu1 %v1267_v6  ;;  %v1275_v11 = vld [vmem:[#allocation5 + $0x40] ss:$16 sps:$4 sm:$0xff]   ;;  %v1276_v12 = vld [vmem:[#allocation5 + $0x48] ss:$16 sps:$4 sm:$0xff]   ;;  %v1277_v13 = vld [vmem:[#allocation5 + $0x64] ss:$16 sps:$4 sm:$0xff]  }
  0x71   : > { %v1279_v14 = vld [vmem:[#allocation5 + $0x6c] ss:$16 sps:$4 sm:$0xff]   ;;  %v1281_v15 = vld [vmem:[#allocation5 + $0x60] ss:$16 sps:$4 sm:$0xff]   ;;  %v1282_v16 = vld [vmem:[#allocation5 + $0x68] ss:$16 sps:$4 sm:$0xff]  }
  0x72   : > { %v1283_v17 = vld [vmem:[#allocation5 + $0x84] ss:$16 sps:$4 sm:$0xff]   ;;  %v1285_v18 = vld [vmem:[#allocation5 + $0x8c] ss:$16 sps:$4 sm:$0xff]   ;;  %v1287_v19 = vld [vmem:[#allocation5 + $0x80] ss:$16 sps:$4 sm:$0xff]  }
  0x73   : > { %382 = vmatpush1.bf16.msra.mxu0 %v1269_v7  ;;  %585 = vmatpush1.bf16.msra.mxu1 %v1270_v8  ;;  %v1288_v20 = vld [vmem:[#allocation5 + $0x88] ss:$16 sps:$4 sm:$0xff]   ;;  %v1289_v21 = vld [vmem:[#allocation5 + $0xa4] ss:$16 sps:$4 sm:$0xff]   ;;  %v1291_v22 = vld [vmem:[#allocation5 + $0xac] ss:$16 sps:$4 sm:$0xff]  }
  0x74   : > { %383 = vmatprep.subr.bf16.mxu0 %v1271_v9  ;;  %586 = vmatprep.subr.bf16.mxu1 %v1273_v10  ;;  %v1293_v23 = vld [vmem:[#allocation5 + $0xa0] ss:$16 sps:$4 sm:$0xff]   ;;  %v1294_v24 = vld [vmem:[#allocation5 + $0xa8] ss:$16 sps:$4 sm:$0xff]   ;;  %v1295_v25 = vld [vmem:[#allocation5 + $0xc4] ss:$16 sps:$4 sm:$0xff]  }
  0x75   : > { %v1297_v26 = vld [vmem:[#allocation5 + $0xcc] ss:$16 sps:$4 sm:$0xff]   ;;  %v1299_v27 = vld [vmem:[#allocation5 + $0xc0] ss:$16 sps:$4 sm:$0xff]   ;;  %v1300_v28 = vld [vmem:[#allocation5 + $0xc8] ss:$16 sps:$4 sm:$0xff]  }
  0x76   : > { %v1301_v29 = vld [vmem:[#allocation5 + $0xe4] ss:$16 sps:$4 sm:$0xff]   ;;  %v1303_v30 = vld [vmem:[#allocation5 + $0xec] ss:$16 sps:$4 sm:$0xff]   ;;  %v1305_v31 = vld [vmem:[#allocation5 + $0xe0] ss:$16 sps:$4 sm:$0xff]  }
  0x77   : > { %384 = vmatpush1.bf16.msra.mxu0 %v1275_v11  ;;  %587 = vmatpush1.bf16.msra.mxu1 %v1276_v12  ;;  %v1306_v32 = vld [vmem:[#allocation5 + $0xe8] ss:$16 sps:$4 sm:$0xff]   ;;  %v1307_v34 = vld [vmem:[#allocation7 + $0xc0] sm:$0xff]   ;;  %v1315_v42 = vld [vmem:[#allocation7 + $0xd0] sm:$0xff]   ;;  %v290_v3 = vshrl.u32 %v289_v2, 7  ;;  %s268_s6 = scalar_lea.vmem [#allocation8], %s1069_s15 }
  0x78   : > { %385 = vmatprep.subr.bf16.mxu0 %v1277_v13  ;;  %588 = vmatprep.subr.bf16.mxu1 %v1279_v14  ;;  %v270_v33 = vld [vmem:[%s1711_s23] sm:$0xf]  ;;  %v1308_v35 = vld [vmem:[#allocation7 + $0x40] sm:$0xff]   ;;  %v1311_v38 = vld [vmem:[#allocation7 + $0xc8] sm:$0xff]   ;;  %s972_s29 = sshll.u32 %s268_s6, 4  ;;  %s959_s17 = scalar_lea.sflag [#allocation4], %s1705_s14  ;;  %s1739_s29 = int_to_ptr.vmem [resolvable:$true] %s972_s29 }
  0x79   : > { %v1309_v36 = vld [vmem:[#allocation7 + $0x80] sm:$0xff]   ;;  %v1312_v39 = vld [vmem:[#allocation7 + $0x48] sm:$0xff]   ;;  %v1316_v43 = vld [vmem:[#allocation7 + $0x50] sm:$0xff]   ;;  %v291_v4 = vsub.s32 0, %v290_v3  ;;  %v295_v7 = vsub.s32 1, %v290_v3  ;;  %s1433_s23 = scalar_lea.vmem %s1739_s29, 64 }
  0x7a   : > { %v1310_v37 = vld [vmem:[#allocation7] sm:$0xff]   ;;  %v1313_v40 = vld [vmem:[#allocation7 + $0x88] sm:$0xff]   ;;  %v1317_v44 = vld [vmem:[#allocation7 + $0x90] sm:$0xff]   ;;  %p1434_p1 = scmp.ne.s32.totalorder %s1739_s29, %s1433_s23  ;;  %s1513_s22 = smov [#allocation8]  }
  0x7b   : > { %386 = vmatpush1.bf16.msra.mxu0 %v1281_v15  ;;  %589 = vmatpush1.bf16.msra.mxu1 %v1282_v16  ;;  %v1314_v41 = vld [vmem:[#allocation7 + $0x8] sm:$0xff]   ;;  %v1318_v45 = vld [vmem:[#allocation7 + $0x10] sm:$0xff]   ;;  %v1319_v46 = vld [vmem:[#allocation7 + $0xd8] sm:$0xff]   ;;  %s1437_s15 = sshll.u32 %s1513_s22, 4  ;;  %s1438_s15 = int_to_ptr.vmem [resolvable:$false] %s1437_s15 }
  0x7c   : > { %387 = vmatprep.subr.bf16.mxu0 %v1283_v17  ;;  %590 = vmatprep.subr.bf16.mxu1 %v1285_v18  ;;  %v1320_v47 = vld [vmem:[#allocation7 + $0x58] sm:$0xff]   ;;  %v1323_v50 = vld [vmem:[#allocation7 + $0xe0] sm:$0xff]   ;;  %v1327_v54 = vld [vmem:[#allocation7 + $0xe8] sm:$0xff]   ;;  %p1435_p2 = pnand %p1434_p1, %p1659_p6  ;;  %s1439_s24 = scalar_lea.vmem %s1438_s15, 128 }
  0x7d   : > { %v1321_v48 = vld [vmem:[#allocation7 + $0x98] sm:$0xff]   ;;  %v1324_v51 = vld [vmem:[#allocation7 + $0x60] sm:$0xff]   ;;  %v1328_v55 = vld [vmem:[#allocation7 + $0x68] sm:$0xff]   ;;  %p1440_p8 = scmp.lt.s32.totalorder %s1739_s29, %s1438_s15  ;;  %p1441_p13 = scmp.lt.s32.totalorder %s1439_s24, %s1433_s23 }
  0x7e   : > { %v1322_v49 = vld [vmem:[#allocation7 + $0x18] sm:$0xff]   ;;  %v1325_v52 = vld [vmem:[#allocation7 + $0xa0] sm:$0xff]   ;;  %v1329_v56 = vld [vmem:[#allocation7 + $0xa8] sm:$0xff]   ;;  %p1436_p4 = pneg %p1435_p2 }
  0x7f   : > { %388 = vmatpush1.bf16.msra.mxu0 %v1287_v19  ;;  %591 = vmatpush1.bf16.msra.mxu1 %v1288_v20  ;;  %v1326_v53 = vld [vmem:[#allocation7 + $0x20] sm:$0xff]   ;;  %v1330_v57 = vld [vmem:[#allocation7 + $0x28] sm:$0xff]   ;;  %v1331_v58 = vld [vmem:[#allocation7 + $0xf0] sm:$0xff]   ;;  %p1442_p3 = por %p1441_p13, %p1440_p8 }
  0x80   : > { %389 = vmatprep.subr.bf16.mxu0 %v1289_v21  ;;  %592 = vmatprep.subr.bf16.mxu1 %v1291_v22  ;;  %v1332_v59 = vld [vmem:[#allocation7 + $0x70] sm:$0xff]   ;;  %v1335_v62 = vld [vmem:[#allocation7 + $0xf8] sm:$0xff]  }
  0x81   : > { %v1333_v60 = vld [vmem:[#allocation7 + $0xb0] sm:$0xff]   ;;  %v1336_v63 = vld [vmem:[#allocation7 + $0x78] sm:$0xff]   ;;  %p1443_p7 = pnand %p1442_p3, %p1436_p4 }
  0x82   : > { %v1334_v61 = vld [vmem:[#allocation7 + $0x30] sm:$0xff]   ;;  %v1337_v0 = vld [vmem:[#allocation7 + $0xb8] sm:$0xff]  }
  0x83   : > { %390 = vmatpush1.bf16.msra.mxu0 %v1293_v23  ;;  %593 = vmatpush1.bf16.msra.mxu1 %v1294_v24  ;;  %v1338_v1 = vld [vmem:[#allocation7 + $0x38] sm:$0xff]  }
  0x84   : > { %391 = vmatprep.subr.bf16.mxu0 %v1295_v25  ;;  %594 = vmatprep.subr.bf16.mxu1 %v1297_v26  ;;  %v287_v5 = vld [vmem:[%s1782_s2] sm:$0x3]  ;;  %v1089_v6 = vld [vmem:[%s1782_s2 + $0x2] sm:$0x3] }
  0x85   : > { %v292_v8 = vrot.slane %v287_v5, %v291_v4  ;;  %v495_v9 = vrot.slane %v1089_v6, %v291_v4  ;;  %v296_v10 = vrot.slane %v287_v5, %v295_v7  ;;  %v499_v11 = vrot.slane %v1089_v6, %v295_v7 }
  0x87   : > { %392 = vmatpush1.bf16.msra.mxu0 %v1299_v27  ;;  %595 = vmatpush1.bf16.msra.mxu1 %v1300_v28 }
  0x88   : > { %393 = vmatprep.subr.bf16.mxu0 %v1301_v29  ;;  %596 = vmatprep.subr.bf16.mxu1 %v1303_v30 }
  0x8b   : > { %394 = vmatpush1.bf16.msra.mxu0 %v1305_v31  ;;  %597 = vmatpush1.bf16.msra.mxu1 %v1306_v32 }
  0x8c   : > { %1143 = vmatprep.subr.bf16.mxu0 %v1307_v34  ;;  %1165 = vmatprep.subr.bf16.mxu1 %v1308_v35 }
  0x8e   : > { %412 = vmatmul.mubr.bf16.vlgmr.msra.gmra.mrb[0].mxu0 %v270_v33  ;;  %615 = vmatmul.mubr.bf16.vlgmr.msra.gmra.mrb[0].mxu1 %v270_v33 }
  0x8f   : > { %1144 = vmatpush3.bf16.msra.mxu0 %v1309_v36  ;;  %1166 = vmatpush3.bf16.msra.mxu1 %v1310_v37 }
  0x90   : > { %1145 = vmatprep.subr.bf16.mxu0 %v1311_v38  ;;  %1167 = vmatprep.subr.bf16.mxu1 %v1312_v39 }
  0x93   : > { %1146 = vmatpush3.bf16.msra.mxu0 %v1313_v40  ;;  %1168 = vmatpush3.bf16.msra.mxu1 %v1314_v41 }
  0x94   : > { %1147 = vmatprep.subr.bf16.mxu0 %v1315_v42  ;;  %1169 = vmatprep.subr.bf16.mxu1 %v1316_v43 }
  0x97   : > { %1148 = vmatpush3.bf16.msra.mxu0 %v1317_v44  ;;  %1170 = vmatpush3.bf16.msra.mxu1 %v1318_v45 }
  0x98   : > { %1149 = vmatprep.subr.bf16.mxu0 %v1319_v46  ;;  %1171 = vmatprep.subr.bf16.mxu1 %v1320_v47 }
  0x9b   : > { %1150 = vmatpush3.bf16.msra.mxu0 %v1321_v48  ;;  %1172 = vmatpush3.bf16.msra.mxu1 %v1322_v49 }
  0x9c   : > { %1151 = vmatprep.subr.bf16.mxu0 %v1323_v50  ;;  %1173 = vmatprep.subr.bf16.mxu1 %v1324_v51 }
  0x9f   : > { %1152 = vmatpush3.bf16.msra.mxu0 %v1325_v52  ;;  %1174 = vmatpush3.bf16.msra.mxu1 %v1326_v53 }
  0xa0   : > { %1153 = vmatprep.subr.bf16.mxu0 %v1327_v54  ;;  %1175 = vmatprep.subr.bf16.mxu1 %v1328_v55 }
  0xa3   : > { %1154 = vmatpush3.bf16.msra.mxu0 %v1329_v56  ;;  %1176 = vmatpush3.bf16.msra.mxu1 %v1330_v57 }
  0xa4   : > { %1155 = vmatprep.subr.bf16.mxu0 %v1331_v58  ;;  %1177 = vmatprep.subr.bf16.mxu1 %v1332_v59 }
  0xa7   : > { %1156 = vmatpush3.bf16.msra.mxu0 %v1333_v60  ;;  %1178 = vmatpush3.bf16.msra.mxu1 %v1334_v61 }
  0xa8   : > { %1157 = vmatprep.subr.bf16.mxu0 %v1335_v62  ;;  %1179 = vmatprep.subr.bf16.mxu1 %v1336_v63 }
  0xab   : > { %1158 = vmatpush3.bf16.msra.mxu0 %v1337_v0  ;;  %1180 = vmatpush3.bf16.msra.mxu1 %v1338_v1 }
 0x161   : > { %v413_v12 = vpop.f32.mrb[0].mxu0  ;;  %v616_v13 = vpop.f32.mrb[0].mxu1 }
 0x162   : > { %v414_v14 = vadd.f32 %v413_v12, %v292_v8  ;;  %v617_v15 = vadd.f32 %v616_v13, %v495_v9  ;;  %v415_v16 = vpop.f32.mrb[1].mxu0  ;;  %v618_v17 = vpop.f32.mrb[1].mxu1  ;;  %v1138_v9 = vld [vmem:[%s1784_s4] ss:$0 sm:$0xff] }
 0x163   : > { %v416_v18 = vadd.f32 %v415_v16, %v296_v10  ;;  %v619_v19 = vadd.f32 %v618_v17, %v499_v11  ;;  %v417_v20 = vpop.f32.mrb[2].mxu0  ;;  %v620_v21 = vpop.f32.mrb[2].mxu1 }
 0x164   : > { %v420_v22 = vmul.f32 %v414_v14, %v414_v14  ;;  %v623_v23 = vmul.f32 %v617_v15, %v617_v15  ;;  %v418_v24 = vpop.f32.mrb[3].mxu0  ;;  %v621_v25 = vpop.f32.mrb[3].mxu1 }
 0x165   : > { %v421_v26 = vmul.f32 %v416_v18, %v416_v18  ;;  %v624_v27 = vmul.f32 %v619_v19, %v619_v19 }
 0x166   : > { %v422_v28 = vmul.f32 %v420_v22, %v414_v14  ;;  %v625_v29 = vmul.f32 %v623_v23, %v617_v15 }
 0x167   : > { %v423_v30 = vmul.f32 %v421_v26, %v416_v18  ;;  %v626_v31 = vmul.f32 %v624_v27, %v619_v19 }
 0x168   : > { %v424_v32 = vmul.f32 0.044715, %v422_v28  ;;  %v627_v33 = vmul.f32 0.044715, %v625_v29 }
 0x169   : > { %v425_v34 = vmul.f32 0.044715, %v423_v30  ;;  %v628_v35 = vmul.f32 0.044715, %v626_v31 }
 0x16a   : > { %v426_v36 = vadd.f32 %v424_v32, %v414_v14  ;;  %v629_v37 = vadd.f32 %v627_v33, %v617_v15 }
 0x16b   : > { %v427_v38 = vadd.f32 %v425_v34, %v416_v18  ;;  %v630_v39 = vadd.f32 %v628_v35, %v619_v19 }
 0x16c   : > { %v428_v40 = vmul.f32 0.7978846, %v426_v36  ;;  %v631_v41 = vmul.f32 0.7978846, %v629_v37 }
 0x16d   : > { %v429_v42 = vmul.f32 0.7978846, %v427_v38  ;;  %v632_v43 = vmul.f32 0.7978846, %v630_v39 }
 0x16e   : > { %1339 = vtanh.f32 %v428_v40 }
 0x16f   : > { %1341 = vtanh.f32 %v631_v41 }
 0x170   : > { %1343 = vtanh.f32 %v429_v42 }
 0x171   : > { %1345 = vtanh.f32 %v632_v43 }
 0x178   : > { %v1340_v44 = vpop.eup %1339 }
 0x179   : > { %v1342_v45 = vpop.eup %1341  ;;  %v432_v46 = vadd.f32 1.0, %v1340_v44 }
 0x17a   : > { %v1344_v47 = vpop.eup %1343  ;;  %v635_v48 = vadd.f32 1.0, %v1342_v45 }
 0x17b   : > { %v1346_v49 = vpop.eup %1345  ;;  %v433_v50 = vadd.f32 1.0, %v1344_v47  ;;  %v434_v51 = vmul.f32 0.5, %v432_v46 }
 0x17c   : > { %v636_v52 = vadd.f32 1.0, %v1346_v49  ;;  %v637_v53 = vmul.f32 0.5, %v635_v48 }
 0x17d   : > { %v435_v54 = vmul.f32 0.5, %v433_v50  ;;  %v436_v56 = vmul.f32 %v434_v51, %v414_v14 }
 0x17e   : > { %v638_v55 = vmul.f32 0.5, %v636_v52  ;;  %v639_v58 = vmul.f32 %v637_v53, %v617_v15 }
 0x17f   : > { %v437_v57 = vmul.f32 %v435_v54, %v416_v18  ;;  %v470_v62 = vpack.c.bf16 %v436_v56, %v436_v56 }
 0x180   : > { %v640_v59 = vmul.f32 %v638_v55, %v619_v19  ;;  %v674_v63 = vpack.c.bf16 %v639_v58, %v639_v58 }
 0x181   : > { %v471_v60 = vpack.c.bf16 %v437_v57, %v437_v57 }
 0x182   : > { %v675_v61 = vpack.c.bf16 %v640_v59, %v640_v59 }
 0x183   : > { %940 = vmatprep.mubr.bf16.mxu1 %v471_v60 }
 0x184   : > { %804 = vmatprep.mubr.bf16.mxu0 %v675_v61  ;;  %941 = vmatmul.mubr.bf16.vlgmr.msra.gmra.mrb[4].mxu1 %v470_v62 }
 0x185   : > { %805 = vmatmul.mubr.bf16.vlgmr.msra.gmra.mrb[4].mxu0 %v674_v63 }
 0x257   : > { %v1181_v0 = vpop.f32.mrb[4].mxu1 }
 0x258   : > { %v1159_v1 = vpop.f32.mrb[4].mxu0  ;;  %v1182_v2 = vpop.f32.mrb[5].mxu1 }
 0x259   : > { %v1160_v3 = vpop.f32.mrb[5].mxu0  ;;  %v1183_v4 = vadd.f32 %v1182_v2, %v1181_v0  ;;  %v1184_v5 = vpop.f32.mrb[6].mxu1 }
 0x25a   : > { %v1161_v6 = vadd.f32 %v1160_v3, %v1159_v1  ;;  %v1162_v7 = vpop.f32.mrb[6].mxu0  ;;  %v1185_v8 = vpop.f32.mrb[7].mxu1 }
 0x25b   : > { %v1163_v10 = vpop.f32.mrb[7].mxu0 }
 0x25c   : > { %v943_v11 = vadd.f32 %v1183_v4, %v1161_v6 }
 0x25e   : > { %v955_v12 = vadd.f32 %v1138_v9, %v943_v11 }
 0x260   : > { %v956_v13 = vpack.c.bf16 %v955_v12, %v955_v12 }
 0x262   : > { %957 = vst [vmem:[%s268_s6] sm:$0xf] %v956_v13 }
 0x263   : > { %1446 = shalt.err (!%p1443_p7)
}
 0x264   : > { %s1447_s14 = scalar_lea.hbm %s1737_s11, 64  ;;  %s1451_s28 = scalar_lea.hbm %s1785_s5, 192 }
 0x265   : > { %p1448_p9 = scmp.ne.s32.totalorder %s1737_s11, %s1447_s14  ;;  %p1452_p0 = scmp.lt.u32.totalorder %s1737_s11, %s1785_s5 }
 0x266   : > { %p1453_p10 = scmp.lt.u32.totalorder %s1451_s28, %s1447_s14  ;;  %p1455_p1 = scmp.lt.u32.totalorder %s1447_s14, %s1737_s11 }
 0x267   : > { %p1449_p12 = pnand %p1448_p9, %p1659_p6 }
 0x268   : > { %p1454_p11 = por %p1453_p10, %p1452_p0 }
 0x269   : > { %p1450_p5 = pneg %p1449_p12 }
 0x26a   : > { %p1456_p2 = por %p1455_p1, %p1454_p11 }
 0x26c   : > { %p1457_p4 = pnand %p1456_p2, %p1450_p5 }
 0x26e   : > { %1460 = shalt.err (!%p1457_p4)
}
 0x26f   : > { %1197 = dma.vmem_to_hbm [thread:$0]  (%p1659_p6), %s1739_s29, 64, %s1737_s11, %s959_s17  }
 0x270 PF: > { %p1219_p8 = scmp.ge.s32.totalorder %s1503_s21, 2  ;;  %s984_s7 = sand.u32 1, %s1491_s18  }
 0x271   : > { %p1800_p13 = scmp.ne.s32.totalorder %s1790_s25, 0  ;;  %s985_s6 = scalar_lea.sflag [#allocation4], %s984_s7 }
 0x273   : > { %p1211_p3 = pnand %p1219_p8, %p1800_p13 }
 0x275   : > { %1486 = dma.done.wait (!%p1211_p3), %s985_s6, 64  }
 0x276   : > { %1488 = vsyncadd (!%p1211_p3), %s985_s6, 4294967232  ;;  %p19_p7 = scmp.ge.s32.totalorder %s1646_s16, 5   ;;  %s1801_s18 = smov %s1495_s19 }
 0x277   : > { %s1802_s19 = smov %s1499_s20  ;;  %s1803_s20 = smov %s1655_s27 }
 0x278   : > { %s1804_s21 = smov %s1646_s16  ;;  %21 = sbr.rel (!%p19_p7) target bundleno = 6 (0x6), region = 96 }
 0x27f   :  { %990 = vsyncpa [#allocation3], 1 }
 0x280   :  { %992 = vsyncpa [#allocation3 + $0x1], 1 }
 0x281   :  { %993 = vsyncpa [#allocation6], 1 }
 0x282   :  { %994 = vsyncpa [#allocation4], 1 }
 0x283   :  { %996 = vsyncpa [#allocation4 + $0x1], 1 }

</bundles_post_ra>
